<compile_context>
chip_gen: v7x
topology: tpu7x:2x2x1
jax: 0.10.0
libtpu: 0.0.40
codegen_flags: <defaults>
</compile_context>

<pallas_src>
import functools

import jax
import jax.numpy as jnp
from jax.experimental import pallas as pl
from jax.experimental.pallas import tpu as pltpu


def _focal_loss_kernel(q_ref, d_ref, y_ref, out_ref, *,
                       scale, batch, block_b, masked):
    i = pl.program_id(0)

    q = q_ref[...]                                 # [TB, D], input dtype
    d = d_ref[...]                                 # [TB, D]
    y = y_ref[...].astype(jnp.float32)             # [TB, 1]

    # Row-wise reductions: products stay in the input dtype; the reduce
    # accumulates in f32 (no full-tile f32 cast temporaries).
    dot = jnp.sum(q * d, axis=-1, keepdims=True, dtype=jnp.float32)   # [TB,1]
    q_sq = jnp.sum(q * q, axis=-1, keepdims=True, dtype=jnp.float32)
    d_sq = jnp.sum(d * d, axis=-1, keepdims=True, dtype=jnp.float32)

    # 1/max(||q||,eps) * 1/max(||d||,eps) via EUP rsqrt.  sqrt is monotone, so
    # rsqrt(max(||.||^2, eps^2)) == 1/max(||.||, eps) — matches PyTorch ATen's
    # per-norm clamping (the documented formula clamps the product instead;
    # results only differ when a norm < 1e-8).
    eps = jnp.float32(1e-8)
    inv = (jax.lax.rsqrt(jnp.maximum(q_sq, eps * eps))
           * jax.lax.rsqrt(jnp.maximum(d_sq, eps * eps)))
    x = jnp.float32(scale) * (dot * inv)           # logits, [TB, 1]

    # Numerically-stable BCE with logits:
    #   loss = max(x, 0) - x*y + log(1 + exp(-|x|))
    per_example = (jnp.maximum(x, 0.0) - x * y
                   + jnp.log(1.0 + jnp.exp(-jnp.abs(x))))   # [TB, 1]

    if masked:
        last = pl.num_programs(0) - 1

        @pl.when(i != last)
        def _steady():
            out_ref[0, 0] = jnp.sum(per_example)

        @pl.when(i == last)
        def _tail():
            # Padded tail rows of the final (partial) block read undefined
            # (OOB) data — mask them out BEFORE the sum.
            row = (jax.lax.broadcasted_iota(jnp.int32, per_example.shape, 0)
                   + i * block_b)
            out_ref[0, 0] = jnp.sum(jnp.where(row < batch, per_example, 0.0))
    else:
        out_ref[0, 0] = jnp.sum(per_example)


def _pick_block_b(B, D, itemsize):
    """Byte-budgeted batch tile, generation-aware."""
    try:
        vmem_cap = int(pltpu.get_tpu_info().vmem_capacity_bytes)
    except Exception:  # interpreter / older jax: be conservative (v7x per-TC)
        vmem_cap = 64 * 1024 * 1024
    # Streamed-tile budget: ~half of physical VMEM, capped at 48 MiB, leaving
    # headroom for Mosaic internal scratch and reduction temporaries
    # (v5e/v6e: 48 MiB of 128 MiB physical; v7x: 32 MiB of 64 MiB).
    tile_budget = max(8 << 20, min(vmem_cap // 2, 48 << 20))
    # Per-row VMEM bytes:
    #   q + d, double-buffered, at the input itemsize : 4 * D * itemsize
    #   fused compute temporaries (counted at f32)    : 2 * D * 4
    #   y block, double-buffered, lane-padded to 128  : 2 * 128 * 4
    per_row = 4 * D * itemsize + 2 * D * 4 + 2 * 128 * 4
    tb = int(tile_budget // max(per_row, 1))
    # bf16 packs 16 rows per sublane group; f32 needs multiples of 8.
    align = 16 if itemsize < 4 else 8
    tb = max(align, (tb // align) * align)
    return tb, vmem_cap, per_row


def focal_loss(query, document, y, *, scale=1.0, reduction="mean",
               block_b=None):
    """Pallas TPU implementation of FocalLoss.forward."""
    assert reduction in ("mean", "sum"), "only 'mean' / 'sum' supported"
    B, D = query.shape
    assert document.shape == (B, D)
    y2d = y.reshape(B, 1)

    itemsize = jnp.dtype(query.dtype).itemsize
    auto_tb, vmem_cap, per_row = _pick_block_b(B, D, itemsize)
    if block_b is None:
        block_b = auto_tb
    if block_b >= B:
        block_b = B                                # single full block
    else:
        align = 16 if itemsize < 4 else 8
        block_b = max(align, (block_b // align) * align)

    num_blocks = pl.cdiv(B, block_b)
    masked = (num_blocks * block_b != B)

    # Explicit scoped-VMEM limit: intended tile footprint + headroom, kept
    # inside physical VMEM (prevents silent block shrinkage at defaults).
    footprint = block_b * per_row
    vmem_limit = int(min(vmem_cap - (8 << 20),
                         max(32 << 20, footprint + (16 << 20))))

    kernel = functools.partial(
        _focal_loss_kernel,
        scale=float(scale), batch=B, block_b=block_b, masked=masked,
    )

    partials = pl.pallas_call(
        kernel,
        out_shape=jax.ShapeDtypeStruct((num_blocks, 1), jnp.float32),
        grid=(num_blocks,),
        in_specs=[
            pl.BlockSpec((block_b, D), lambda i: (i, 0)),   # query
            pl.BlockSpec((block_b, D), lambda i: (i, 0)),   # document
            pl.BlockSpec((block_b, 1), lambda i: (i, 0)),   # y
        ],
        out_specs=pl.BlockSpec((1, 1), lambda i: (i, 0),
                               memory_space=pltpu.MemorySpace.SMEM),
        compiler_params=pltpu.CompilerParams(
            dimension_semantics=("parallel",),
            vmem_limit_bytes=vmem_limit,
        ),
    )(query, document, y2d)

    total = jnp.sum(partials)
    if reduction == "mean":
        total = total * jnp.float32(1.0 / B)
    return total


def _reference(query, document, y, *, scale=1.0, reduction="mean"):
    q = query.astype(jnp.float32)
    d = document.astype(jnp.float32)
    eps = 1e-8
    cos = jnp.sum(q * d, axis=1) / (
        jnp.maximum(jnp.linalg.norm(q, axis=1), eps)
        * jnp.maximum(jnp.linalg.norm(d, axis=1), eps)
    )
    x = scale * cos
    loss = jnp.maximum(x, 0.0) - x * y + jnp.log1p(jnp.exp(-jnp.abs(x)))
    return jnp.mean(loss) if reduction == "mean" else jnp.sum(loss)


if __name__ == "__main__":
    # Case 1: tiny shapes, single full block, mean reduction, f32.
    kq, kd, ky = jax.random.split(jax.random.PRNGKey(0), 3)
    B, D = 8, 32
    query = jax.random.normal(kq, (B, D), dtype=jnp.float32)
    document = jax.random.normal(kd, (B, D), dtype=jnp.float32)
    y = jax.random.bernoulli(ky, 0.5, (B,)).astype(jnp.float32)

    loss = jax.block_until_ready(
        focal_loss(query, document, y, scale=1.0, reduction="mean"))
    ref = _reference(query, document, y, scale=1.0, reduction="mean")
    assert jnp.allclose(loss, ref, rtol=1e-5, atol=1e-5), (loss, ref)

    # Case 2: forced small tile -> tiled "parallel" grid with a ragged tail,
    # sum reduction, f32.
    kq2, kd2, ky2 = jax.random.split(jax.random.PRNGKey(1), 3)
    B2, D2 = 50, 128
    q2 = jax.random.normal(kq2, (B2, D2), dtype=jnp.float32)
    d2 = jax.random.normal(kd2, (B2, D2), dtype=jnp.float32)
    y2 = jax.random.bernoulli(ky2, 0.5, (B2,)).astype(jnp.float32)

    loss2 = jax.block_until_ready(
        focal_loss(q2, d2, y2, scale=2.0, reduction="sum", block_b=16))
    ref2 = _reference(q2, d2, y2, scale=2.0, reduction="sum")
    assert jnp.allclose(loss2, ref2, rtol=1e-4, atol=1e-4), (loss2, ref2)

    # Case 3: bf16 input path (products in bf16, f32 accumulation), mean.
    kq3, kd3, ky3 = jax.random.split(jax.random.PRNGKey(2), 3)
    B3, D3 = 64, 256
    q3 = jax.random.normal(kq3, (B3, D3), dtype=jnp.bfloat16)
    d3 = jax.random.normal(kd3, (B3, D3), dtype=jnp.bfloat16)
    y3 = jax.random.bernoulli(ky3, 0.5, (B3,)).astype(jnp.float32)

    loss3 = jax.block_until_ready(
        focal_loss(q3, d3, y3, scale=1.0, reduction="mean"))
    ref3 = _reference(q3, d3, y3, scale=1.0, reduction="mean")
    assert jnp.allclose(loss3, ref3, rtol=3e-2, atol=3e-2), (loss3, ref3)

    print("KERNEL_OK")
</pallas_src>

<mosaic_0001>
module attributes {stable_mosaic.version = 11 : i64} {
  func.func @_focal_loss_kernel(%arg0: i32, %arg1: memref<8x32xf32, #tpu.memory_space<vmem>>, %arg2: memref<8x32xf32, #tpu.memory_space<vmem>>, %arg3: memref<8x1xf32, #tpu.memory_space<vmem>>, %arg4: memref<1x1xf32, #tpu.memory_space<smem>>) attributes {dimension_semantics = [#tpu.dimension_semantics<parallel>], iteration_bounds = array<i64: 1>, scalar_prefetch = 0 : i64, scratch_operands = 0 : i64, tpu.core_type = #tpu.core_type<tc>, window_params = [{transform_indices = @transform_0, window_bounds = array<i64: 8, 32>}, {transform_indices = @transform_1, window_bounds = array<i64: 8, 32>}, {transform_indices = @transform_2, window_bounds = array<i64: 8, 1>}, {transform_indices = @transform_3, window_bounds = array<i64: 1, 1>}]} {
    %c0 = arith.constant 0 : index
    %c0_0 = arith.constant 0 : index
    %0 = vector.load %arg1[%c0, %c0_0] : memref<8x32xf32, #tpu.memory_space<vmem>>, vector<8x32xf32>
    %c0_1 = arith.constant 0 : index
    %c0_2 = arith.constant 0 : index
    %1 = vector.load %arg2[%c0_1, %c0_2] : memref<8x32xf32, #tpu.memory_space<vmem>>, vector<8x32xf32>
    %c0_3 = arith.constant 0 : index
    %c0_4 = arith.constant 0 : index
    %2 = vector.load %arg3[%c0_3, %c0_4] : memref<8x1xf32, #tpu.memory_space<vmem>>, vector<8x1xf32>
    %3 = arith.mulf %0, %1 : vector<8x32xf32>
    %cst = arith.constant dense<0.000000e+00> : vector<8xf32>
    %4 = vector.multi_reduction <add>, %3, %cst [1] : vector<8x32xf32> to vector<8xf32>
    %5 = vector.shape_cast %4 : vector<8xf32> to vector<8x1xf32>
    %6 = arith.mulf %0, %0 : vector<8x32xf32>
    %cst_5 = arith.constant dense<0.000000e+00> : vector<8xf32>
    %7 = vector.multi_reduction <add>, %6, %cst_5 [1] : vector<8x32xf32> to vector<8xf32>
    %8 = vector.shape_cast %7 : vector<8xf32> to vector<8x1xf32>
    %9 = arith.mulf %1, %1 : vector<8x32xf32>
    %cst_6 = arith.constant dense<0.000000e+00> : vector<8xf32>
    %10 = vector.multi_reduction <add>, %9, %cst_6 [1] : vector<8x32xf32> to vector<8xf32>
    %11 = vector.shape_cast %10 : vector<8xf32> to vector<8x1xf32>
    %cst_7 = arith.constant 9.99999993E-9 : f32
    %cst_8 = arith.constant 9.99999993E-9 : f32
    %12 = arith.mulf %cst_7, %cst_8 : f32
    %13 = vector.broadcast %12 : f32 to vector<8x1xf32>
    %14 = arith.maximumf %8, %13 : vector<8x1xf32>
    %15 = math.rsqrt %14 : vector<8x1xf32>
    %cst_9 = arith.constant 9.99999993E-9 : f32
    %cst_10 = arith.constant 9.99999993E-9 : f32
    %16 = arith.mulf %cst_9, %cst_10 : f32
    %17 = vector.broadcast %16 : f32 to vector<8x1xf32>
    %18 = arith.maximumf %11, %17 : vector<8x1xf32>
    %19 = math.rsqrt %18 : vector<8x1xf32>
    %20 = arith.mulf %15, %19 : vector<8x1xf32>
    %21 = arith.mulf %5, %20 : vector<8x1xf32>
    %cst_11 = arith.constant 1.000000e+00 : f32
    %22 = vector.broadcast %cst_11 : f32 to vector<8x1xf32>
    %23 = arith.mulf %22, %21 : vector<8x1xf32>
    %cst_12 = arith.constant 0.000000e+00 : f32
    %24 = vector.broadcast %cst_12 : f32 to vector<8x1xf32>
    %25 = arith.maximumf %23, %24 : vector<8x1xf32>
    %26 = arith.mulf %23, %2 : vector<8x1xf32>
    %27 = arith.subf %25, %26 : vector<8x1xf32>
    %28 = math.absf %23 : vector<8x1xf32>
    %cst_13 = arith.constant 0.000000e+00 : f32
    %29 = vector.broadcast %cst_13 : f32 to vector<8x1xf32>
    %30 = arith.subf %29, %28 : vector<8x1xf32>
    %31 = math.exp %30 : vector<8x1xf32>
    %cst_14 = arith.constant 1.000000e+00 : f32
    %32 = vector.broadcast %cst_14 : f32 to vector<8x1xf32>
    %33 = arith.addf %32, %31 : vector<8x1xf32>
    %34 = math.log %33 : vector<8x1xf32>
    %35 = arith.addf %27, %34 : vector<8x1xf32>
    %36 = vector.shape_cast %35 : vector<8x1xf32> to vector<1x8x1xf32>
    %cst_15 = arith.constant dense<0.000000e+00> : vector<1xf32>
    %37 = vector.multi_reduction <add>, %36, %cst_15 [1, 2] : vector<1x8x1xf32> to vector<1xf32>
    %38 = vector.shape_cast %37 : vector<1xf32> to vector<1x1x1xf32>
    %39 = vector.extract %38[0, 0, 0] : f32 from vector<1x1x1xf32>
    %c0_16 = arith.constant 0 : index
    %c0_17 = arith.constant 0 : index
    %40 = memref.load %arg4[%c0_16, %c0_17] : memref<1x1xf32, #tpu.memory_space<smem>>
    memref.store %39, %arg4[%c0_16, %c0_17] : memref<1x1xf32, #tpu.memory_space<smem>>
    return
  }
  func.func @transform_0(%arg0: i32) -> (i32, i32) {
    %c0_i32 = arith.constant 0 : i32
    %c0_i32_0 = arith.constant 0 : i32
    return %arg0, %c0_i32 : i32, i32
  }
  func.func @transform_1(%arg0: i32) -> (i32, i32) {
    %c0_i32 = arith.constant 0 : i32
    %c0_i32_0 = arith.constant 0 : i32
    return %arg0, %c0_i32 : i32, i32
  }
  func.func @transform_2(%arg0: i32) -> (i32, i32) {
    %c0_i32 = arith.constant 0 : i32
    %c0_i32_0 = arith.constant 0 : i32
    return %arg0, %c0_i32 : i32, i32
  }
  func.func @transform_3(%arg0: i32) -> (i32, i32) {
    %c0_i32 = arith.constant 0 : i32
    %c0_i32_0 = arith.constant 0 : i32
    return %arg0, %c0_i32 : i32, i32
  }
}

</mosaic_0001>

<bundles_post_ra>
// kernel: tpu_custom_call.1
= control target key start
LH: loop header
LB: loop body
LE: loop exit
PB: predicated region body
PF: predicated region fallthrough
CT: control target
= control target key end

     0   :  { %8 = vsyncpa [#allocation3], 0  ;;  %s187_s0 = inlined_call_operand.vmem [shape: f32[8,32], index: 0, kind: input, shape index: {}]   ;;  %s188_s1 = inlined_call_operand.hbm [shape: f32[8,32], index: 1, kind: input, shape index: {}]   ;;  %s189_s2 = inlined_call_operand.vmem [shape: f32[8,1], index: 2, kind: input, shape index: {}]   ;;  %s190_s3 = inlined_call_operand.hbm [shape: f32[1,1], index: 3, kind: output, shape index: {}]  }
   0x1   :  { %9 = vsyncpa [#allocation4], 0  ;;  %s135_s12 = smov [#allocation2]   ;;  %s99_s16 = scalar_lea.hbm %s188_s1, 128 }
   0x2   :  { %s18_s13 = sshll.u32 %s135_s12, 4  ;;  %p100_p0 = scmp.ne.s32.totalorder %s188_s1, %s99_s16  ;;  %s19_s13 = int_to_ptr.vmem [resolvable:$true] %s18_s13 }
   0x3   :  { %p103_p1 = scmp.lt.u32.totalorder %s99_s16, %s188_s1 }
   0x5   :  { %p105_p2 = pnand %p103_p1, %p100_p0 }
   0x7   :  { %108 = shalt.err (!%p105_p2)
}
   0x8   :  { %s109_s21 = scalar_lea.vmem %s19_s13, 128  ;;  %p114_p4 = scmp.lt.s32.totalorder %s19_s13, %s19_s13 }
   0x9   :  { %p110_p3 = scmp.ne.s32.totalorder %s19_s13, %s109_s21  ;;  %p115_p5 = scmp.lt.s32.totalorder %s109_s21, %s109_s21 }
   0xb   :  { %p116_p6 = por %p115_p5, %p114_p4 }
   0xd   :  { %p117_p7 = pnand %p116_p6, %p110_p3 }
   0xf   :  { %120 = shalt.err (!%p117_p7)
}
  0x10   :  { %21 = dma.hbm_to_vmem [thread:$0]  %s188_s1, 128, %s19_s13, [#allocation3]  }
  0x11   :  { %131 = dma.done.wait [#allocation3], 128  }
  0x12   :  { %132 = vsyncadd [#allocation3], 4294967168  ;;  %v27_v0 = vld [vmem:[%s187_s0] sm:$0xff]  ;;  %vm31_vm0 = vcmask 261120   ;;  %vm60_vm1 = vcmask 7168   ;;  %s121_s28 = scalar_lea.hbm %s190_s3, 16 }
  0x13   :  { %v28_v1 = vld [vmem:[#allocation2] sm:$0xff]  ;;  %v35_v2 = vmul.f32 %v27_v0, %v27_v0  ;;  %p122_p8 = scmp.ne.s32.totalorder %s190_s3, %s121_s28  ;;  %p125_p9 = scmp.lt.u32.totalorder %s121_s28, %s190_s3 }
  0x14   :  { %v39_v3 = vmul.f32 %v28_v1, %v28_v1  ;;  %v30_v4 = vmul.f32 %v28_v1, %v27_v0  ;;  %v29_v22 = vld [vmem:[%s189_s2] sm:$0xff] }
  0x15   :  { %v36_v5 = vsel %vm31_vm0, %v35_v2, 0.0  ;;  %p127_p10 = pnand %p125_p9, %p122_p8 }
  0x16   :  { %v32_v6 = vsel %vm31_vm0, %v30_v4, 0.0  ;;  %37 = vadd.xlane.f32.xlu0 %v36_v5  ;;  %v40_v7 = vsel %vm31_vm0, %v39_v3, 0.0 }
  0x17   :  { %33 = vadd.xlane.f32.xlu1 %v32_v6 }
  0x1a   :  { %41 = vadd.xlane.f32.xlu0 %v40_v7 }
  0xa3   :  { %v38_v8 = vpop.xlane.xlu0 %37 }
  0xa4   :  { %v43_v9 = vmax.f32 %v38_v8, 1e-16  ;;  %v34_v14 = vpop.xlane.xlu1 %33 }
  0xa6   :  { %91 = vrsqrt.f32 %v43_v9 }
  0xa7   :  { %v42_v10 = vpop.xlane.xlu0 %41 }
  0xa8   :  { %v45_v11 = vmax.f32 %v42_v10, 1e-16 }
  0xaa   :  { %93 = vrsqrt.f32 %v45_v11 }
  0xb0   :  { %v92_v12 = vpop.eup %91 }
  0xb4   :  { %v94_v13 = vpop.eup %93 }
  0xb5   :  { %v47_v15 = vmul.f32 %v94_v13, %v92_v12 }
  0xb7   :  { %v48_v16 = vmul.f32 %v47_v15, %v34_v14 }
  0xb9   :  { %v52_v17 = vand.u32 2147483647, %v48_v16  ;;  %v49_v23 = vmax.f32 %v48_v16, 0.0  ;;  %v50_v24 = vmul.f32 %v48_v16, %v29_v22 }
  0xbb   :  { %v53_v18 = vsub.f32 0.0, %v52_v17  ;;  %v51_v26 = vsub.f32 %v49_v23, %v50_v24 }
  0xbd   :  { %v54_v19 = vmul.f32 1.442695, %v53_v18 }
  0xbf   :  { %95 = vpow2.f32 %v54_v19 }
  0xc9   :  { %v96_v20 = vpop.eup %95 }
  0xca   :  { %v56_v21 = vadd.f32 1.0, %v96_v20 }
  0xcc   :  { %97 = vlog2.f32 %v56_v21 }
  0xd6   :  { %v98_v25 = vpop.eup %97 }
  0xd7   :  { %v58_v27 = vmul.f32 0.6931472, %v98_v25 }
  0xd9   :  { %v59_v28 = vadd.f32 %v58_v27, %v51_v26 }
  0xdb   :  { %v61_v29 = vsel %vm60_vm1, %v59_v28, 0.0 }
  0xdc   :  { %62 = vadd.xlane.f32.xlu1 %v61_v29 }
 0x169   :  { %v63_v30 = vpop.xlane.xlu1 %62 }
 0x16a   :  { %v64_v31 = vrot.slane %v63_v30, 4 }
 0x16c   :  { %v65_v32 = vadd.f32 %v64_v31, %v63_v30 }
 0x16e   :  { %v66_v33 = vrot.slane %v65_v32, 2 }
 0x170   :  { %v67_v34 = vadd.f32 %v66_v33, %v65_v32 }
 0x172   :  { %v68_v35 = vrot.slane %v67_v34, 1 }
 0x174   :  { %v69_v36 = vadd.f32 %v68_v35, %v67_v34 }
 0x176   :  { %87 = vpush %v69_v36 }
 0x1a7   :  { %s88_s26 = spop %87 }
 0x1a8   :  { %72 = sst [smem:[#allocation5]] %s88_s26 }
 0x1a9   :  { %130 = shalt.err (!%p127_p10)
}
 0x1aa   :  { %s136_s6 = smov [#allocation5]  }
 0x1ab   :  { %80 = dma.smem_to_hbm %s136_s6, 16, %s190_s3, [#allocation4]  }
 0x1ac   :  { %133 = dma.done.wait [#allocation4], 16  }
 0x1ad   :  { %134 = vsyncadd [#allocation4], 4294967280 }
 0x1ae   :  { %84 = sfence }
 0x1af   :  { %85 = vsyncpa [#allocation3], 1 }
 0x1b0   :  { %86 = vsyncpa [#allocation4], 1 }

</bundles_post_ra>
